<compile_context>
chip_gen: v7x
topology: tpu7x:2x2x1
jax: 0.10.0
libtpu: 0.0.40
codegen_flags: <defaults>
</compile_context>

<pallas_src>
import jax
import jax.numpy as jnp
import numpy as np
from jax import lax
from jax.experimental import pallas as pl
from jax.experimental.pallas import tpu as pltpu

# Module hyper-parameters (from Quantizer.__init__ defaults)
TP = 8
FP = 4
QUANTIZE_CLIP = False

SCALE = float(2 ** FP)                      # 16.0
INV_SCALE = 1.0 / SCALE                     # 0.0625
RANGE_I = 2 ** TP                           # 256
HALF_RANGE_I = RANGE_I // 2                 # 128
INT_BITS = TP - FP                          # 4
MAX_VAL = float(2 ** (INT_BITS - 1) - 1)    # 7.0
MIN_VAL = float(-(2 ** (INT_BITS - 1)))     # -8.0
MAX_SCALED = MAX_VAL * SCALE                # 112.0
MIN_SCALED = MIN_VAL * SCALE                # -128.0


def _round_up(a, b):
    return ((a + b - 1) // b) * b


def _make_kernel(tile_rows, lane_cols, valid_rows, need_mask):
    """Build the kernel with static tiling / masking parameters closed over."""

    def kernel(x_ref, o_ref, loss_ref, count_ref):
        x = x_ref[...]
        if x.dtype != jnp.float32:
            x = x.astype(jnp.float32)

        # Shared scaled value for both the stats path and the quant path.
        xs = x * SCALE

        if need_mask:
            # Tail tile reads past the end of the array; zero those rows for
            # the statistics (0 is neutral for both loss and clipped count).
            row = lax.broadcasted_iota(jnp.int32, (tile_rows, lane_cols), 0)
            valid = (pl.program_id(0) * tile_rows + row) < valid_rows
            xs_stats = jnp.where(valid, xs, 0.0)
        else:
            xs_stats = xs

        # Clipping statistics (scaled domain; identical to the torch formula):
        #   max(x - MAX_VAL, -0.5/S)*S == max(xs - MAX_VAL*S, -0.5), etc.
        above = jnp.maximum(xs_stats - MAX_SCALED, -0.5)
        below = jnp.maximum(MIN_SCALED - xs_stats, -0.5)
        outside = jnp.maximum(above, below)
        loss_ref[...] = jnp.sum(jnp.maximum(outside + 0.5, 0.0),
                                axis=0, keepdims=True)[None]
        count_ref[...] = jnp.sum((outside > 0.0).astype(jnp.int32),
                                 axis=0, keepdims=True)[None]

        # quantize_clip=False -> wrap-around modulo path: floor(x*2^fp), wrap
        # mod 2^tp into [-2^(tp-1), 2^(tp-1)) via a power-of-two mask (no fmod).
        qi = jnp.floor(xs).astype(jnp.int32)
        wrapped = jnp.bitwise_and(qi + HALF_RANGE_I, RANGE_I - 1) - HALF_RANGE_I
        o_ref[...] = (wrapped.astype(jnp.float32) * INV_SCALE).astype(o_ref.dtype)

    return kernel


def quantizer_forward(x, *, max_tile_rows=512, preferred_lane_cols=2048):
    """Returns (quantized_x, clipping_loss, num_clipped, num_total)."""
    orig_shape = x.shape
    D = int(orig_shape[-1])          # original last dim (for mean(-1).sum())
    N = int(x.size)

    # Pick the widest lane count that divides N so the reshape is a free view
    # (no pad / extra HBM pass).  Pad minimally only when nothing divides.
    lane_cols = None
    for c in (preferred_lane_cols, 1024, 512, 256, 128):
        if c <= preferred_lane_cols and N % c == 0:
            lane_cols = c
            break
    padded = lane_cols is None
    if padded:
        lane_cols = preferred_lane_cols
        padded_n = _round_up(N, lane_cols)
        # Zero padding is neutral for loss/count; padded outputs sliced away.
        x2 = jnp.pad(x.reshape(-1), (0, padded_n - N)).reshape(-1, lane_cols)
    else:
        padded_n = N
        x2 = x.reshape(-1, lane_cols)
    R = padded_n // lane_cols

    # Row tiling: up to 4 MiB blocks.  tile_rows is always either a multiple
    # of 8 or equal to the full row extent (legal block shapes), and never
    # larger than R.
    if R <= max_tile_rows:
        tile_rows = R
        if R >= 16:
            half = _round_up((R + 1) // 2, 8)
            if half < R:                 # split so both v7x TCs get a tile
                tile_rows = half
    else:
        tile_rows = max_tile_rows
    num_tiles = pl.cdiv(R, tile_rows)
    need_mask = (R % tile_rows) != 0

    kernel = _make_kernel(tile_rows, lane_cols, R, need_mask)

    out2, loss_stats, count_stats = pl.pallas_call(
        kernel,
        out_shape=(
            jax.ShapeDtypeStruct((R, lane_cols), x.dtype),
            jax.ShapeDtypeStruct((num_tiles, 1, lane_cols), jnp.float32),
            jax.ShapeDtypeStruct((num_tiles, 1, lane_cols), jnp.int32),
        ),
        grid_spec=pltpu.PrefetchScalarGridSpec(
            num_scalar_prefetch=0,
            grid=(num_tiles,),
            in_specs=[pl.BlockSpec((tile_rows, lane_cols), lambda i: (i, 0))],
            out_specs=[
                pl.BlockSpec((tile_rows, lane_cols), lambda i: (i, 0)),
                pl.BlockSpec((1, 1, lane_cols), lambda i: (i, 0, 0)),
                pl.BlockSpec((1, 1, lane_cols), lambda i: (i, 0, 0)),
            ],
        ),
        compiler_params=pltpu.CompilerParams(
            dimension_semantics=("parallel",),
            vmem_limit_bytes=48 << 20,   # 4 MiB blocks double-buffered on v5e too
        ),
        # x2 is a wrapper-created temp only when it was padded; donate it then.
        input_output_aliases=({0: 0} if padded else {}),
    )(x2)

    # relu(...).mean(-1).sum() == sum(all) / D  (D = ORIGINAL last dim)
    clipping_loss = jnp.sum(loss_stats) / D
    num_clipped = jnp.sum(count_stats)          # int32, exact
    num_total = N

    if padded:
        out = out2.reshape(-1)[:N].reshape(orig_shape)
    else:
        out = out2.reshape(orig_shape)
    return out, clipping_loss, num_clipped, num_total


def _reference_forward(x):
    """Pure-JAX reference mirroring the torch module exactly."""
    x = x.astype(jnp.float32)
    above_max = jnp.maximum(x - MAX_VAL, -0.5 / SCALE) * SCALE
    below_min = jnp.maximum(MIN_VAL - x, -0.5 / SCALE) * SCALE
    outside = jnp.maximum(above_max, below_min)
    clipping_loss = jnp.sum(jnp.mean(jnp.maximum(outside + 0.5, 0.0), axis=-1))
    num_clipped = jnp.sum(x > MAX_VAL) + jnp.sum(x < MIN_VAL)
    rng = float(RANGE_I)
    q = jnp.floor(x * SCALE)
    wrapped = jnp.fmod(jnp.fmod(q + rng / 2.0, rng) + rng, rng)
    out = (wrapped - rng / 2.0) / SCALE
    return out, clipping_loss, num_clipped


if __name__ == "__main__":
    fwd = jax.jit(quantizer_forward)

    # Case 1: lane-aligned shape (free reshape, single tile, no mask).
    x1 = jax.random.uniform(jax.random.PRNGKey(0), (2, 8, 128),
                            dtype=jnp.float32, minval=-12.0, maxval=12.0)
    # Case 2: N not divisible by 128 (exercises the minimal-pad + donate path).
    x2 = jax.random.uniform(jax.random.PRNGKey(1), (3, 5, 50),
                            dtype=jnp.float32, minval=-12.0, maxval=12.0)
    # Case 3: rows not divisible by tile_rows (exercises the in-kernel mask).
    x3 = jax.random.uniform(jax.random.PRNGKey(2), (2, 10, 2048),
                            dtype=jnp.float32, minval=-12.0, maxval=12.0)

    for x in (x1, x2, x3):
        out, clipping_loss, num_clipped, num_total = fwd(x)
        jax.block_until_ready(out)
        jax.block_until_ready(clipping_loss)
        jax.block_until_ready(num_clipped)

        ref_out, ref_loss, ref_clipped = _reference_forward(x)
        np.testing.assert_allclose(np.asarray(out), np.asarray(ref_out),
                                   rtol=0, atol=1e-5)
        np.testing.assert_allclose(np.asarray(clipping_loss),
                                   np.asarray(ref_loss),
                                   rtol=2e-5, atol=1e-3)
        assert int(num_clipped) == int(ref_clipped)
        assert int(num_total) == x.size

    print("KERNEL_OK")
</pallas_src>

<mosaic_0001>
module attributes {stable_mosaic.version = 11 : i64} {
  func.func @kernel(%arg0: i32, %arg1: memref<1x2048xf32, #tpu.memory_space<vmem>>, %arg2: memref<1x2048xf32, #tpu.memory_space<vmem>>, %arg3: memref<1x1x2048xf32, #tpu.memory_space<vmem>>, %arg4: memref<1x1x2048xi32, #tpu.memory_space<vmem>>) attributes {dimension_semantics = [#tpu.dimension_semantics<parallel>], iteration_bounds = array<i64: 1>, scalar_prefetch = 0 : i64, scratch_operands = 0 : i64, tpu.core_type = #tpu.core_type<tc>, window_params = [{transform_indices = @transform_0, window_bounds = array<i64: 1, 2048>}, {transform_indices = @transform_1, window_bounds = array<i64: 1, 2048>}, {transform_indices = @transform_2, window_bounds = array<i64: 1, 1, 2048>}, {transform_indices = @transform_3, window_bounds = array<i64: 1, 1, 2048>}]} {
    %c0 = arith.constant 0 : index
    %c0_0 = arith.constant 0 : index
    %0 = vector.load %arg1[%c0, %c0_0] : memref<1x2048xf32, #tpu.memory_space<vmem>>, vector<1x2048xf32>
    %cst = arith.constant 1.600000e+01 : f32
    %1 = vector.broadcast %cst : f32 to vector<1x2048xf32>
    %2 = arith.mulf %0, %1 : vector<1x2048xf32>
    %cst_1 = arith.constant 1.120000e+02 : f32
    %3 = vector.broadcast %cst_1 : f32 to vector<1x2048xf32>
    %4 = arith.subf %2, %3 : vector<1x2048xf32>
    %cst_2 = arith.constant -5.000000e-01 : f32
    %5 = vector.broadcast %cst_2 : f32 to vector<1x2048xf32>
    %6 = arith.maximumf %4, %5 : vector<1x2048xf32>
    %cst_3 = arith.constant -1.280000e+02 : f32
    %7 = vector.broadcast %cst_3 : f32 to vector<1x2048xf32>
    %8 = arith.subf %7, %2 : vector<1x2048xf32>
    %cst_4 = arith.constant -5.000000e-01 : f32
    %9 = vector.broadcast %cst_4 : f32 to vector<1x2048xf32>
    %10 = arith.maximumf %8, %9 : vector<1x2048xf32>
    %11 = arith.maximumf %6, %10 : vector<1x2048xf32>
    %cst_5 = arith.constant 5.000000e-01 : f32
    %12 = vector.broadcast %cst_5 : f32 to vector<1x2048xf32>
    %13 = arith.addf %11, %12 : vector<1x2048xf32>
    %cst_6 = arith.constant 0.000000e+00 : f32
    %14 = vector.broadcast %cst_6 : f32 to vector<1x2048xf32>
    %15 = arith.maximumf %13, %14 : vector<1x2048xf32>
    %cst_7 = arith.constant dense<0.000000e+00> : vector<2048xf32>
    %16 = vector.multi_reduction <add>, %15, %cst_7 [0] : vector<1x2048xf32> to vector<2048xf32>
    %17 = vector.shape_cast %16 : vector<2048xf32> to vector<1x2048xf32>
    %18 = vector.shape_cast %17 : vector<1x2048xf32> to vector<1x1x2048xf32>
    %c0_8 = arith.constant 0 : index
    %c0_9 = arith.constant 0 : index
    %c0_10 = arith.constant 0 : index
    %19 = vector.load %arg3[%c0_8, %c0_9, %c0_10] : memref<1x1x2048xf32, #tpu.memory_space<vmem>>, vector<1x1x2048xf32>
    tpu.vector_store %arg3[%c0_8, %c0_9, %c0_10], %18 {strides = array<i32>} : memref<1x1x2048xf32, #tpu.memory_space<vmem>>, vector<1x1x2048xf32>,
    %cst_11 = arith.constant 0.000000e+00 : f32
    %20 = vector.broadcast %cst_11 : f32 to vector<1x2048xf32>
    %21 = arith.cmpf ogt, %11, %20 : vector<1x2048xf32>
    %22 = arith.extui %21 : vector<1x2048xi1> to vector<1x2048xi32>
    %cst_12 = arith.constant dense<0> : vector<2048xi32>
    %23 = vector.multi_reduction <add>, %22, %cst_12 [0] : vector<1x2048xi32> to vector<2048xi32>
    %24 = vector.shape_cast %23 : vector<2048xi32> to vector<1x2048xi32>
    %25 = vector.shape_cast %24 : vector<1x2048xi32> to vector<1x1x2048xi32>
    %c0_13 = arith.constant 0 : index
    %c0_14 = arith.constant 0 : index
    %c0_15 = arith.constant 0 : index
    %26 = vector.load %arg4[%c0_13, %c0_14, %c0_15] : memref<1x1x2048xi32, #tpu.memory_space<vmem>>, vector<1x1x2048xi32>
    tpu.vector_store %arg4[%c0_13, %c0_14, %c0_15], %25 {strides = array<i32>} : memref<1x1x2048xi32, #tpu.memory_space<vmem>>, vector<1x1x2048xi32>,
    %27 = math.floor %2 : vector<1x2048xf32>
    %28 = arith.fptosi %27 : vector<1x2048xf32> to vector<1x2048xi32>
    %c128_i32 = arith.constant 128 : i32
    %29 = vector.broadcast %c128_i32 : i32 to vector<1x2048xi32>
    %30 = arith.addi %28, %29 : vector<1x2048xi32>
    %c255_i32 = arith.constant 255 : i32
    %31 = vector.broadcast %c255_i32 : i32 to vector<1x2048xi32>
    %32 = arith.andi %30, %31 : vector<1x2048xi32>
    %c128_i32_16 = arith.constant 128 : i32
    %33 = vector.broadcast %c128_i32_16 : i32 to vector<1x2048xi32>
    %34 = arith.subi %32, %33 : vector<1x2048xi32>
    %35 = arith.sitofp %34 : vector<1x2048xi32> to vector<1x2048xf32>
    %cst_17 = arith.constant 6.250000e-02 : f32
    %36 = vector.broadcast %cst_17 : f32 to vector<1x2048xf32>
    %37 = arith.mulf %35, %36 : vector<1x2048xf32>
    %c0_18 = arith.constant 0 : index
    %c0_19 = arith.constant 0 : index
    %38 = vector.load %arg2[%c0_18, %c0_19] : memref<1x2048xf32, #tpu.memory_space<vmem>>, vector<1x2048xf32>
    tpu.vector_store %arg2[%c0_18, %c0_19], %37 {strides = array<i32>} : memref<1x2048xf32, #tpu.memory_space<vmem>>, vector<1x2048xf32>,
    return
  }
  func.func @transform_0(%arg0: i32) -> (i32, i32) {
    %c0_i32 = arith.constant 0 : i32
    %c0_i32_0 = arith.constant 0 : i32
    return %arg0, %c0_i32 : i32, i32
  }
  func.func @transform_1(%arg0: i32) -> (i32, i32) {
    %c0_i32 = arith.constant 0 : i32
    %c0_i32_0 = arith.constant 0 : i32
    return %arg0, %c0_i32 : i32, i32
  }
  func.func @transform_2(%arg0: i32) -> (i32, i32, i32) {
    %c0_i32 = arith.constant 0 : i32
    %c0_i32_0 = arith.constant 0 : i32
    %c0_i32_1 = arith.constant 0 : i32
    return %arg0, %c0_i32, %c0_i32_0 : i32, i32, i32
  }
  func.func @transform_3(%arg0: i32) -> (i32, i32, i32) {
    %c0_i32 = arith.constant 0 : i32
    %c0_i32_0 = arith.constant 0 : i32
    %c0_i32_1 = arith.constant 0 : i32
    return %arg0, %c0_i32, %c0_i32_0 : i32, i32, i32
  }
}

</mosaic_0001>

<bundles_post_ra>
// kernel: quantizer_forward.1
= control target key start
LH: loop header
LB: loop body
LE: loop exit
PB: predicated region body
PF: predicated region fallthrough
CT: control target
= control target key end

     0   :  { %9 = vsyncpa [#allocation3], 0  ;;  %s209_s0 = inlined_call_operand.hbm [shape: f32[1,2048], index: 0, kind: input, shape index: {}]   ;;  %s210_s1 = inlined_call_operand.hbm [shape: f32[1,2048], index: 1, kind: output, shape index: {0}]   ;;  %s211_s2 = inlined_call_operand.vmem [shape: f32[1,1,2048], index: 2, kind: output, shape index: {1}]   ;;  %s212_s3 = inlined_call_operand.vmem [shape: s32[1,1,2048], index: 3, kind: output, shape index: {2}]  }
   0x1   :  { %10 = vsyncpa [#allocation4], 0  ;;  %s150_s12 = smov [#allocation2]   ;;  %s102_s16 = scalar_lea.hbm %s209_s0, 256 }
   0x2   :  { %s17_s13 = sshll.u32 %s150_s12, 4  ;;  %p103_p0 = scmp.ne.s32.totalorder %s209_s0, %s102_s16  ;;  %s18_s13 = int_to_ptr.vmem [resolvable:$true] %s17_s13 }
   0x3   :  { %p106_p1 = scmp.lt.u32.totalorder %s102_s16, %s209_s0 }
   0x5   :  { %p108_p2 = pnand %p106_p1, %p103_p0 }
   0x7   :  { %111 = shalt.err (!%p108_p2)
}
   0x8   :  { %s112_s21 = scalar_lea.vmem %s18_s13, 256  ;;  %p117_p4 = scmp.lt.s32.totalorder %s18_s13, %s18_s13 }
   0x9   :  { %p113_p3 = scmp.ne.s32.totalorder %s18_s13, %s112_s21  ;;  %p118_p5 = scmp.lt.s32.totalorder %s112_s21, %s112_s21 }
   0xb   :  { %p119_p6 = por %p118_p5, %p117_p4 }
   0xd   :  { %p120_p7 = pnand %p119_p6, %p113_p3 }
   0xf   :  { %123 = shalt.err (!%p120_p7)
}
  0x10   :  { %20 = dma.hbm_to_vmem [thread:$0]  %s209_s0, 256, %s18_s13, [#allocation3]  }
  0x11   :  { %146 = dma.done.wait [#allocation3], 256  }
  0x12   :  { %147 = vsyncadd [#allocation3], 4294967040  ;;  %v24_v0 = vld [vmem:[#allocation2] sm:$0xff]  ;;  %v25_v1 = vld [vmem:[#allocation2 + $0x8] sm:$0xff]  ;;  %v151_v24 = vmov 0   ;;  %s152_s4 = smov [#allocation5]  }
  0x13   :  { %v26_v2 = vmul.f32 16.0, %v24_v0  ;;  %v27_v3 = vmul.f32 16.0, %v25_v1  ;;  %s74_s5 = sshll.u32 %s152_s4, 4  ;;  %s75_s5 = int_to_ptr.vmem [resolvable:$true] %s74_s5 }
  0x14   :  { %p129_p9 = scmp.lt.s32.totalorder %s75_s5, %s75_s5 }
  0x15   :  { %v52_v4 = vfloor.f32 %v26_v2  ;;  %v53_v5 = vfloor.f32 %v27_v3  ;;  %v91_v6 = vadd.f32 -112.0, %v26_v2  ;;  %v32_v7 = vsub.f32 -128.0, %v26_v2 }
  0x16   :  { %v92_v8 = vadd.f32 -112.0, %v27_v3  ;;  %v33_v9 = vsub.f32 -128.0, %v27_v3 }
  0x17   :  { %v95_v10 = vtrunc.f32 %v52_v4  ;;  %v97_v11 = vtrunc.f32 %v53_v5  ;;  %v30_v12 = vmax.f32 %v91_v6, -0.5  ;;  %v34_v13 = vmax.f32 %v32_v7, -0.5 }
  0x18   :  { %v31_v14 = vmax.f32 %v92_v8, -0.5  ;;  %v35_v15 = vmax.f32 %v33_v9, -0.5 }
  0x19   :  { %v96_v16 = vcvt.f32.s32 %v95_v10  ;;  %v98_v17 = vcvt.f32.s32 %v97_v11  ;;  %v36_v18 = vmax.f32 %v30_v12, %v34_v13 }
  0x1a   :  { %v37_v19 = vmax.f32 %v31_v14, %v35_v15 }
  0x1b   :  { %v56_v20 = vadd.s32 128, %v96_v16  ;;  %v57_v21 = vadd.s32 128, %v98_v17  ;;  %v38_v22 = vadd.f32 0.5, %v36_v18  ;;  %vm46_vm0 = vcmp.gt.f32.partialorder %v36_v18, 0.0 }
  0x1c   :  { %v39_v23 = vadd.f32 0.5, %v37_v19  ;;  %v48_v25 = vsel %vm46_vm0, 1, %v151_v24  ;;  %vm47_vm1 = vcmp.gt.f32.partialorder %v37_v19, 0.0 }
  0x1d   :  { %v58_v26 = vand.u32 255, %v56_v20  ;;  %v59_v27 = vand.u32 255, %v57_v21  ;;  %v40_v28 = vmax.f32 %v38_v22, 0.0  ;;  %50 = vst [vmem:[%s212_s3] sm:$0xff] %v48_v25  ;;  %v49_v29 = vsel %vm47_vm1, 1, %v151_v24 }
  0x1e   :  { %v41_v30 = vmax.f32 %v39_v23, 0.0  ;;  %51 = vst [vmem:[%s212_s3 + $0x8] sm:$0xff] %v49_v29  ;;  %s124_s3 = scalar_lea.vmem %s75_s5, 256 }
  0x1f   :  { %v93_v31 = vadd.s32 4294967168, %v58_v26  ;;  %v94_v32 = vadd.s32 4294967168, %v59_v27  ;;  %44 = vst [vmem:[%s211_s2] sm:$0xff] %v40_v28  ;;  %p125_p8 = scmp.ne.s32.totalorder %s75_s5, %s124_s3  ;;  %p130_p10 = scmp.lt.s32.totalorder %s124_s3, %s124_s3 }
  0x20   :  { %45 = vst [vmem:[%s211_s2 + $0x8] sm:$0xff] %v41_v30 }
  0x21   :  { %v62_v33 = vcvt.s32.f32 %v93_v31  ;;  %v63_v34 = vcvt.s32.f32 %v94_v32  ;;  %p131_p11 = por %p130_p10, %p129_p9 }
  0x23   :  { %v64_v35 = vmul.f32 0.0625, %v62_v33  ;;  %v65_v36 = vmul.f32 0.0625, %v63_v34  ;;  %p132_p12 = pnand %p131_p11, %p125_p8 }
  0x25   :  { %66 = vst [vmem:[#allocation5] sm:$0xff] %v64_v35  ;;  %67 = vst [vmem:[#allocation5 + $0x8] sm:$0xff] %v65_v36 }
  0x26   :  { %135 = shalt.err (!%p132_p12)
}
  0x27   :  { %s136_s2 = scalar_lea.hbm %s210_s1, 256 }
  0x28   :  { %p137_p13 = scmp.ne.s32.totalorder %s210_s1, %s136_s2  ;;  %p140_p0 = scmp.lt.u32.totalorder %s136_s2, %s210_s1 }
  0x2a   :  { %p142_p1 = pnand %p140_p0, %p137_p13 }
  0x2c   :  { %145 = shalt.err (!%p142_p1)
}
  0x2d   :  { %77 = dma.vmem_to_hbm [thread:$0]  %s75_s5, 256, %s210_s1, [#allocation4]  }
  0x2e   :  { %148 = dma.done.wait [#allocation4], 256  }
  0x2f   :  { %149 = vsyncadd [#allocation4], 4294967040 }
  0x30   :  { %89 = vsyncpa [#allocation3], 1 }
  0x31   :  { %90 = vsyncpa [#allocation4], 1 }

</bundles_post_ra>
